<compile_context>
chip_gen: v7x
topology: tpu7x:2x2x1
jax: 0.10.0
libtpu: 0.0.40
codegen_flags: <defaults>
</compile_context>

<pallas_src>
import functools

import jax
import jax.numpy as jnp
from jax import lax
from jax.experimental import pallas as pl
from jax.experimental.pallas import tpu as pltpu

N_EMBD = 64
HEAD_SIZE = 16
BLOCK_SIZE = 128   # max context length (size of the torch tril buffer)
NEG_INF = -1e30    # finite "minus infinity": exp underflows to 0, never NaNs


# --------------------------------------------------------------------------- #
# kernels
# --------------------------------------------------------------------------- #
def _batch_kernel(x_ref, wqkv_ref, o_ref, *, bf16_exp):
    """Grid over batch blocks. x_ref: (Bblk,T,C) bf16; wqkv_ref: (C,3H) bf16
    packed [k | v | q]; o_ref: (Bblk,T,H)."""
    Bblk, T, C = x_ref.shape
    H = o_ref.shape[-1]

    x16 = x_ref[...]                      # already bf16 (cast at call boundary)
    w16 = wqkv_ref[...]                   # resident bf16 weight slab

    # fused QKV projection: one tall (Bblk*T, C) x (C, 3H) MXU matmul.
    # NOTE: if T is not a multiple of 16 (bf16 sublane) and Bblk > 1 this
    # reshape may relayout; _pick_batch_block keeps Bblk=1 tiny-T cases cheap.
    qkv = jnp.dot(x16.reshape(Bblk * T, C), w16,
                  preferred_element_type=jnp.float32)            # (Bblk*T, 3H)
    qkv = qkv.reshape(Bblk, T, 3 * H)
    k = qkv[:, :, 0 * H:1 * H]
    v = qkv[:, :, 1 * H:2 * H]
    q = qkv[:, :, 2 * H:3 * H]

    # fold 1/sqrt(H) into q (T*H elements) instead of scaling the (T,T) scores
    q = q * (float(H) ** -0.5)

    # causally-masked scores; contract the head axis directly (no k.T relayout)
    wei = jnp.einsum('bqh,bkh->bqk',
                     q.astype(jnp.bfloat16), k.astype(jnp.bfloat16),
                     preferred_element_type=jnp.float32)          # (Bblk, T, T)

    # (1,T,T) iotas; jnp.where broadcasts the mask over Bblk
    row = lax.broadcasted_iota(jnp.int32, (1, T, T), 1)
    col = lax.broadcasted_iota(jnp.int32, (1, T, T), 2)
    wei = jnp.where(col <= row, wei, NEG_INF)

    # numerically stable softmax; EUP reciprocal for the normalization
    m = jnp.max(wei, axis=-1, keepdims=True)
    if bf16_exp:   # v6e/v7x: bf16 EUP roughly doubles exp throughput
        e = jnp.exp((wei - m).astype(jnp.bfloat16))
        s = jnp.sum(e.astype(jnp.float32), axis=-1, keepdims=True)
        p16 = e * pl.reciprocal(s, approx=True).astype(jnp.bfloat16)
    else:          # v5e and older: no bf16 EUP/VPU, stay f32
        e = jnp.exp(wei - m)
        s = jnp.sum(e, axis=-1, keepdims=True)
        p16 = (e * pl.reciprocal(s, approx=True)).astype(jnp.bfloat16)

    # TODO(synk): nn.Dropout(0.2) is identity in eval mode; training-time
    # stochastic dropout (pltpu.prng_seed / prng_random_bits) not implemented.

    out = jnp.einsum('bqk,bkh->bqh', p16, v.astype(jnp.bfloat16),
                     preferred_element_type=jnp.float32)          # (Bblk, T, H)
    o_ref[...] = out.astype(o_ref.dtype)


def _qsplit_kernel(x_ref, wqkv_ref, o_ref, *, bf16_exp):
    """Small-batch fallback: grid = (B, T//tq), query rows split across steps
    so both v7x TensorCores stay busy. x_ref: (T,C) bf16 (batch dim squeezed);
    wqkv_ref: (C,3H) bf16 [k | v | q]; o_ref: (tq,H)."""
    T, C = x_ref.shape
    tq, H = o_ref.shape
    qi = pl.program_id(1)
    q_start = pl.multiple_of(qi * tq, tq)

    x16 = x_ref[...]                       # (T, C) bf16
    w16 = wqkv_ref[...]                    # (C, 3H) bf16

    # K / V projections over the full sequence (k|v are the first 2H columns)
    kv = jnp.dot(x16, w16[:, :2 * H], preferred_element_type=jnp.float32)
    k = kv[:, :H]
    v = kv[:, H:2 * H]

    # Q projection only for this query block
    xq = x_ref[pl.ds(q_start, tq), :]      # (tq, C) bf16
    q = jnp.dot(xq, w16[:, 2 * H:], preferred_element_type=jnp.float32)
    q = q * (float(H) ** -0.5)

    wei = jnp.einsum('qh,kh->qk',
                     q.astype(jnp.bfloat16), k.astype(jnp.bfloat16),
                     preferred_element_type=jnp.float32)          # (tq, T)

    row = lax.broadcasted_iota(jnp.int32, (tq, T), 0) + q_start
    col = lax.broadcasted_iota(jnp.int32, (tq, T), 1)
    wei = jnp.where(col <= row, wei, NEG_INF)

    m = jnp.max(wei, axis=-1, keepdims=True)
    if bf16_exp:
        e = jnp.exp((wei - m).astype(jnp.bfloat16))
        s = jnp.sum(e.astype(jnp.float32), axis=-1, keepdims=True)
        p16 = e * pl.reciprocal(s, approx=True).astype(jnp.bfloat16)
    else:
        e = jnp.exp(wei - m)
        s = jnp.sum(e, axis=-1, keepdims=True)
        p16 = (e * pl.reciprocal(s, approx=True)).astype(jnp.bfloat16)

    out = jnp.einsum('qk,kh->qh', p16, v.astype(jnp.bfloat16),
                     preferred_element_type=jnp.float32)          # (tq, H)
    o_ref[...] = out.astype(o_ref.dtype)


# --------------------------------------------------------------------------- #
# tiling heuristics
# --------------------------------------------------------------------------- #
def _pick_batch_block(B, T):
    """Batch elements per grid step.

    Targets Bblk*T ~ 256-1024 MXU rows (cap 1024//T), budgets VMEM against
    v5e's 16 MiB scoped default (also safe on v7x's 64 MiB physical), and
    prefers >= 4 grid steps (>= 2 per TensorCore on v7x), then >= 2, then 1.
    Requires B % Bblk == 0.
    """
    C, H = N_EMBD, HEAD_SIZE
    per_elem = (2 * T * C * 2        # double-buffered bf16 x
                + 2 * T * H * 4      # double-buffered f32 out
                + 3 * T * T * 4      # scores + exp/p temporaries (f32)
                + T * 3 * H * 4      # f32 qkv accumulation
                + T * C * 2)         # bf16 staging
    vmem_budget = 12 << 20
    cap = max(1, min(vmem_budget // per_elem, max(1, 1024 // T), B))
    divisors = [d for d in range(1, B + 1) if B % d == 0 and d <= cap]
    for min_steps in (4, 2, 1):
        cands = [d for d in divisors if B // d >= min_steps]
        if cands:
            return max(cands)
    return 1


def _pick_q_block(B, T):
    """Query-axis tile for the small-batch path: largest multiple of 16 that
    divides T and still yields >= 4 total grid steps. None if no valid split."""
    best = None
    for tq in range(16, T, 16):
        if T % tq == 0 and B * (T // tq) >= 4:
            best = tq
    return best


def _use_bf16_exp():
    try:
        kind = jax.devices()[0].device_kind.lower()
    except Exception:
        return False
    return ("v6" in kind) or ("v7" in kind)


# --------------------------------------------------------------------------- #
# public API
# --------------------------------------------------------------------------- #
def pack_head_weights(w_key, w_query, w_value):
    """One-time weight prep (hoisted out of the per-call forward): pack the
    three (C, H) projection weights into a single bf16 (C, 3H) slab [k | v | q].
    """
    return jnp.concatenate([w_key, w_value, w_query], axis=1).astype(jnp.bfloat16)


def head_forward(x, wqkv, *, bf16_exp=None):
    """x: (B, T, C); wqkv: packed (C, 3H) from pack_head_weights.
    Returns (B, T, H) in x.dtype. Eval-mode (dropout = identity)."""
    B, T, C = x.shape
    H = wqkv.shape[1] // 3
    assert C == N_EMBD and T <= BLOCK_SIZE
    if bf16_exp is None:
        bf16_exp = _use_bf16_exp()

    x16 = x.astype(jnp.bfloat16)       # halve the x HBM->VMEM traffic
    w16 = wqkv.astype(jnp.bfloat16)    # no-op if already packed bf16

    # --- small-batch fallback: split the query axis across the grid ---------
    if B < 4:
        tq = _pick_q_block(B, T)
        if tq is not None:
            return pl.pallas_call(
                functools.partial(_qsplit_kernel, bf16_exp=bf16_exp),
                out_shape=jax.ShapeDtypeStruct((B, T, H), x.dtype),
                grid_spec=pltpu.PrefetchScalarGridSpec(
                    num_scalar_prefetch=0,
                    grid=(B, T // tq),
                    in_specs=[
                        # batch dim squeezed; full (T, C) sequence per step
                        pl.BlockSpec((None, T, C), lambda b, qi: (b, 0, 0)),
                        # grid-invariant resident weight block
                        pl.BlockSpec((C, 3 * H), lambda b, qi: (0, 0)),
                    ],
                    out_specs=pl.BlockSpec((None, tq, H),
                                           lambda b, qi: (b, qi, 0)),
                ),
                compiler_params=pltpu.CompilerParams(
                    dimension_semantics=("parallel", "parallel")),
            )(x16, w16)

    # --- main path: batch-blocked grid ---------------------------------------
    Bblk = _pick_batch_block(B, T)
    grid = (B // Bblk,)

    # NOTE: output last dim is H=16 (single head) -> masked partial stores; a
    # lane-dense (>=128) output would require fusing multiple heads, which is
    # outside this single-head module's interface.
    return pl.pallas_call(
        functools.partial(_batch_kernel, bf16_exp=bf16_exp),
        out_shape=jax.ShapeDtypeStruct((B, T, H), x.dtype),
        grid_spec=pltpu.PrefetchScalarGridSpec(
            num_scalar_prefetch=0,
            grid=grid,
            in_specs=[
                pl.BlockSpec((Bblk, T, C), lambda b: (b, 0, 0)),
                # grid-invariant weight block: kept resident, not re-DMAed
                pl.BlockSpec((C, 3 * H), lambda b: (0, 0)),
            ],
            out_specs=pl.BlockSpec((Bblk, T, H), lambda b: (b, 0, 0)),
        ),
        compiler_params=pltpu.CompilerParams(
            dimension_semantics=("parallel",)),
    )(x16, w16)


def head_forward_from_weights(x, w_key, w_query, w_value):
    """Convenience wrapper that packs the weights per call (prefer packing once
    with pack_head_weights and calling head_forward)."""
    return head_forward(x, pack_head_weights(w_key, w_query, w_value))


def head_reference(x, w_key, w_query, w_value):
    """Pure-JAX f32 reference mirroring the PyTorch forward (eval mode)."""
    k = x @ w_key
    q = x @ w_query
    v = x @ w_value
    wei = (q @ jnp.swapaxes(k, -2, -1)) * (k.shape[-1] ** -0.5)
    T = x.shape[1]
    tril = jnp.tril(jnp.ones((T, T), dtype=bool))
    wei = jnp.where(tril, wei, -jnp.inf)
    wei = jax.nn.softmax(wei, axis=-1)
    return wei @ v


if __name__ == "__main__":
    key = jax.random.PRNGKey(0)
    kx, kk, kq, kv = jax.random.split(key, 4)

    C, H = N_EMBD, HEAD_SIZE
    # deterministic "Linear(n_embd, head_size, bias=False)" weights, stored as
    # (C, H) so the kernel does x @ W (== x @ weight.T in torch terms).
    bound = 1.0 / (C ** 0.5)
    w_key = jax.random.uniform(kk, (C, H), jnp.float32, -bound, bound)
    w_query = jax.random.uniform(kq, (C, H), jnp.float32, -bound, bound)
    w_value = jax.random.uniform(kv, (C, H), jnp.float32, -bound, bound)

    # one-time weight packing, hoisted out of the forward path
    wqkv = pack_head_weights(w_key, w_query, w_value)

    # primary small-shape check + two extra configs exercising the batch-block
    # and query-split code paths.
    for i, (B, T) in enumerate([(2, 8), (8, 64), (1, 128)]):
        x = jax.random.normal(jax.random.fold_in(kx, i), (B, T, C),
                              dtype=jnp.float32)
        out = jax.block_until_ready(head_forward(x, wqkv))
        ref = head_reference(x, w_key, w_query, w_value)
        assert out.shape == (B, T, H)
        # tolerance reflects bf16 MXU inputs + bf16 exp + approx reciprocal
        assert jnp.allclose(out, ref, atol=5e-2, rtol=5e-2), \
            f"mismatch vs reference at B={B}, T={T}"

    print("KERNEL_OK")
</pallas_src>

<mosaic_0001>
module attributes {stable_mosaic.version = 11 : i64} {
  func.func @_batch_kernel(%arg0: i32, %arg1: memref<1x8x64xbf16, #tpu.memory_space<vmem>>, %arg2: memref<64x48xbf16, #tpu.memory_space<vmem>>, %arg3: memref<1x8x16xf32, #tpu.memory_space<vmem>>) attributes {dimension_semantics = [#tpu.dimension_semantics<parallel>], iteration_bounds = array<i64: 2>, scalar_prefetch = 0 : i64, scratch_operands = 0 : i64, tpu.core_type = #tpu.core_type<tc>, window_params = [{transform_indices = @transform_0, window_bounds = array<i64: 1, 8, 64>}, {pipeline_mode = #tpu.pipeline_mode<synchronous>, transform_indices = @transform_1, window_bounds = array<i64: 64, 48>}, {transform_indices = @transform_2, window_bounds = array<i64: 1, 8, 16>}]} {
    %c0 = arith.constant 0 : index
    %c0_0 = arith.constant 0 : index
    %c0_1 = arith.constant 0 : index
    %0 = vector.load %arg1[%c0, %c0_0, %c0_1] : memref<1x8x64xbf16, #tpu.memory_space<vmem>>, vector<1x8x64xbf16>
    %c0_2 = arith.constant 0 : index
    %c0_3 = arith.constant 0 : index
    %1 = vector.load %arg2[%c0_2, %c0_3] : memref<64x48xbf16, #tpu.memory_space<vmem>>, vector<64x48xbf16>
    %2 = vector.shape_cast %0 : vector<1x8x64xbf16> to vector<8x64xbf16>
    %cst = arith.constant dense<0.000000e+00> : vector<8x48xf32>
    %3 = tpu.matmul %2, %1, %cst {dimension_numbers = #tpu.dot_dimension_numbers<[1], [0], [0], [1], [0, 0, 1, 1], [], []>} : vector<8x64xbf16>, vector<64x48xbf16>, vector<8x48xf32> -> vector<8x48xf32>
    %4 = vector.shape_cast %3 : vector<8x48xf32> to vector<1x8x48xf32>
    %5 = vector.extract_strided_slice %4 {offsets = [0, 0, 0], sizes = [1, 8, 16], strides = [1, 1, 1]} : vector<1x8x48xf32> to vector<1x8x16xf32>
    %6 = vector.extract_strided_slice %4 {offsets = [0, 0, 16], sizes = [1, 8, 16], strides = [1, 1, 1]} : vector<1x8x48xf32> to vector<1x8x16xf32>
    %7 = vector.extract_strided_slice %4 {offsets = [0, 0, 32], sizes = [1, 8, 16], strides = [1, 1, 1]} : vector<1x8x48xf32> to vector<1x8x16xf32>
    %cst_4 = arith.constant 2.500000e-01 : f32
    %8 = vector.broadcast %cst_4 : f32 to vector<1x8x16xf32>
    %9 = arith.mulf %7, %8 : vector<1x8x16xf32>
    %10 = arith.truncf %9 : vector<1x8x16xf32> to vector<1x8x16xbf16>
    %11 = arith.truncf %5 : vector<1x8x16xf32> to vector<1x8x16xbf16>
    "tpu.trace_start"() <{level = 10 : i32, message = "bqh,bkh->bqk"}> : () -> ()
    %cst_5 = arith.constant dense<0.000000e+00> : vector<1x8x8xf32>
    %12 = tpu.matmul %10, %11, %cst_5 {dimension_numbers = #tpu.dot_dimension_numbers<[2], [2], [1], [1], [0, 0, 0, 1, 1, 1], [0], [0]>} : vector<1x8x16xbf16>, vector<1x8x16xbf16>, vector<1x8x8xf32> -> vector<1x8x8xf32>
    "tpu.trace_stop"() : () -> ()
    %13 = tpu.iota {dimensions = array<i32: 1>} : vector<1x8x8xi32>
    %14 = tpu.iota {dimensions = array<i32: 2>} : vector<1x8x8xi32>
    %15 = arith.cmpi sle, %14, %13 : vector<1x8x8xi32>
    %cst_6 = arith.constant -1.000000e+30 : f32
    %16 = vector.broadcast %cst_6 : f32 to vector<1x8x8xf32>
    %17 = arith.select %15, %12, %16 : vector<1x8x8xi1>, vector<1x8x8xf32>
    %cst_7 = arith.constant dense<0xFF800000> : vector<1x8xf32>
    %18 = vector.multi_reduction <maximumf>, %17, %cst_7 [2] : vector<1x8x8xf32> to vector<1x8xf32>
    %19 = vector.shape_cast %18 : vector<1x8xf32> to vector<1x8x1xf32>
    %20 = vector.broadcast %19 : vector<1x8x1xf32> to vector<1x8x8xf32>
    %21 = arith.subf %17, %20 : vector<1x8x8xf32>
    %22 = math.exp %21 : vector<1x8x8xf32>
    %cst_8 = arith.constant dense<0.000000e+00> : vector<1x8xf32>
    %23 = vector.multi_reduction <add>, %22, %cst_8 [2] : vector<1x8x8xf32> to vector<1x8xf32>
    %24 = vector.shape_cast %23 : vector<1x8xf32> to vector<1x8x1xf32>
    %25 = tpu.reciprocal %24 {approx = true} : vector<1x8x1xf32> -> vector<1x8x1xf32>
    %26 = vector.broadcast %25 : vector<1x8x1xf32> to vector<1x8x8xf32>
    %27 = arith.mulf %22, %26 : vector<1x8x8xf32>
    %28 = arith.truncf %27 : vector<1x8x8xf32> to vector<1x8x8xbf16>
    %29 = arith.truncf %6 : vector<1x8x16xf32> to vector<1x8x16xbf16>
    "tpu.trace_start"() <{level = 10 : i32, message = "bqk,bkh->bqh"}> : () -> ()
    %cst_9 = arith.constant dense<0.000000e+00> : vector<1x8x16xf32>
    %30 = tpu.matmul %28, %29, %cst_9 {dimension_numbers = #tpu.dot_dimension_numbers<[2], [1], [1], [2], [0, 0, 0, 1, 1, 2], [0], [0]>} : vector<1x8x8xbf16>, vector<1x8x16xbf16>, vector<1x8x16xf32> -> vector<1x8x16xf32>
    "tpu.trace_stop"() : () -> ()
    %c0_10 = arith.constant 0 : index
    %c0_11 = arith.constant 0 : index
    %c0_12 = arith.constant 0 : index
    %31 = vector.load %arg3[%c0_10, %c0_11, %c0_12] : memref<1x8x16xf32, #tpu.memory_space<vmem>>, vector<1x8x16xf32>
    tpu.vector_store %arg3[%c0_10, %c0_11, %c0_12], %30 {strides = array<i32>} : memref<1x8x16xf32, #tpu.memory_space<vmem>>, vector<1x8x16xf32>,
    return
  }
  func.func @transform_0(%arg0: i32) -> (i32, i32, i32) {
    %c0_i32 = arith.constant 0 : i32
    %c0_i32_0 = arith.constant 0 : i32
    %c0_i32_1 = arith.constant 0 : i32
    return %arg0, %c0_i32, %c0_i32_0 : i32, i32, i32
  }
  func.func @transform_1(%arg0: i32) -> (i32, i32) {
    %c0_i32 = arith.constant 0 : i32
    %c0_i32_0 = arith.constant 0 : i32
    %c0_i32_1 = arith.constant 0 : i32
    return %c0_i32, %c0_i32_0 : i32, i32
  }
  func.func @transform_2(%arg0: i32) -> (i32, i32, i32) {
    %c0_i32 = arith.constant 0 : i32
    %c0_i32_0 = arith.constant 0 : i32
    %c0_i32_1 = arith.constant 0 : i32
    return %arg0, %c0_i32, %c0_i32_0 : i32, i32, i32
  }
}

</mosaic_0001>

<bundles_post_ra>
// kernel: tpu_custom_call.1
= control target key start
LH: loop header
LB: loop body
LE: loop exit
PB: predicated region body
PF: predicated region fallthrough
CT: control target
= control target key end

     0   :  { %7 = vsyncpa [#allocation3], 0  ;;  %s719_s0 = inlined_call_operand.vmem [shape: bf16[2,8,64], index: 0, kind: input, shape index: {}]   ;;  %s720_s1 = inlined_call_operand.vmem [shape: bf16[64,48], index: 1, kind: input, shape index: {}]   ;;  %s721_s2 = inlined_call_operand.hbm [shape: f32[2,8,16], index: 2, kind: output, shape index: {}]  }
   0x1   :  { %9 = vsyncpa [#allocation3 + $0x1], 0  ;;  %s598_s9 = smov 0   ;;  %s600_s10 = smov 0  }
   0x2   :  { %s602_s11 = smov 0   ;;  %s604_s12 = smov 0  }
   0x3 LB: > { %s619_s13 = sadd.s32 4294967295, %s576_s12   ;;  %s413_s14 = sadd.s32 4294967294, %s576_s12   ;;  %s576_s12 = sphi %s604_s12, %s727_s12   ;;  %s572_s11 = sphi %s602_s11, %s726_s11   ;;  %s568_s10 = sphi %s600_s10, %s725_s10   ;;  %s564_s9 = sphi %s598_s9, %s724_s9  }
   0x4   : > { %s623_s15 = sadd.s32 1, %s576_s12   ;;  %s69_s16 = sadd.s32 1, %s572_s11 }
   0x5   : > { %s66_s17 = ssub.s32 %s576_s12, %s623_s15  ;;  %p79_p0 = scmp.ne.s32.totalorder %s572_s11, %s568_s10 }
   0x6   : > { %p67_p1 = scmp.eq.s32.totalorder %s66_s17, 0  ;;  %p80_p2 = scmp.eq.s32.totalorder %s619_s13, 1 }
   0x7   : > { %p85_p3 = scmp.ne.s32.totalorder %s568_s10, %s564_s9  ;;  %p86_p4 = scmp.eq.s32.totalorder %s413_s14, 1 }
   0x8   : > { %s634_s18 = scalar_select %p67_p1, %s572_s11, %s69_s16  }
   0x9   : > { %p636_p5 = por %p80_p2, %p79_p0  ;;  %p640_p6 = por %p86_p4, %p85_p3 }
   0xa   : > { %p416_p7 = scmp.ge.s32.totalorder %s576_s12, 1  ;;  %p114_p8 = scmp.lt.s32.totalorder %s576_s12, 3 }
   0xc   : > { %p115_p9 = pnand %p416_p7, %p114_p8 }
   0xd   : > { %v506_v0 = vld [vmem:[%s720_s1] sm:$0xff] (!%p115_p9)   ;;  %v578_v1 = vmov (!%p115_p9), 0.0   ;;  %v507_v2 = vld [vmem:[%s720_s1 + $0x8] sm:$0xff] (!%p115_p9)   ;;  %vm579_vm0 = vmmov (!%p115_p9), 0   ;;  %p135_p10 = scmp.lt.s32.totalorder (!%p115_p9), %s619_s13, 1  ;;  %v508_v3 = vld [vmem:[%s720_s1 + $0x10] sm:$0xff] (!%p115_p9)   ;;  %v270_v15 = vlaneseq (!%p115_p9) }
   0xe   : > { %118 = sbr.rel (%p115_p9) target bundleno = 1117 (0x45d), region = 28  ;;  %439 = vmatprep.subr.bf16.mxu0 (!%p115_p9), %v578_v1  ;;  %451 = vmatprep.subr.bf16.mxu1 (!%p115_p9), %v578_v1  ;;  %v509_v4 = vld [vmem:[%s720_s1 + $0x18] sm:$0xff] (!%p115_p9)   ;;  %vm173_vm1 = vcmask (!%p115_p9), 523264   ;;  %vm223_vm2 = vcmask (!%p115_p9), 130048   ;;  %s580_s6 = smov (!%p115_p9), 96   ;;  %vm276_vm4 = vcmask (!%p115_p9), 64512  }
   0xf   : > { %440 = vmatpush3.bf16.msra.mxu0 (!%p115_p9), %v506_v0  ;;  %447 = vmatprep.mubr.msk.bf16.mxu0 (!%p115_p9), %vm579_vm0, %v578_v1  ;;  %v271_v16 = vshrl.u32 (!%p115_p9), %v270_v15, 7  ;;  %v273_v17 = vand.u32 (!%p115_p9), 127, %v270_v15  ;;  %s581_s7 = smov (!%p115_p9), 112   ;;  %vm295_vm5 = vcmask (!%p115_p9), 1043456   ;;  %s132_s8 = sand.u32 (!%p115_p9), 1, %s568_s10  }
  0x10   : > { %441 = vmatprep.subr.bf16.mxu0 (!%p115_p9), %v578_v1  ;;  %453 = vmatprep.mubr.msk.bf16.mxu1 (!%p115_p9), %vm579_vm0, %v578_v1  ;;  %s417_s14 = sshll.u32 (!%p115_p9), %s132_s8, 3  ;;  %s427_s16 = sshll.u32 (!%p115_p9), %s619_s13, 7 }
  0x11   : > { %vm274_vm3 = vcmp.le.s32.totalorder (!%p115_p9), %v273_v17, %v271_v16  ;;  %s134_s17 = scalar_lea.vmem (!%p115_p9), [#allocation2], %s417_s14  ;;  %s676_s24 = scalar_lea.hbm (!%p115_p9), %s721_s2, %s427_s16 }
  0x12   : > { %s354_s21 = sshll.u32 (!%p115_p9), %s134_s17, 4  ;;  %s678_s21 = int_to_ptr.vmem [resolvable:$true] %s354_s21 }
  0x13   : > { %442 = vmatpush3.bf16.msra.mxu0 (!%p115_p9), %v507_v2  ;;  %s514_s26 = scalar_lea.vmem (!%p115_p9), %s678_s21, 128 }
  0x14   : > { %443 = vmatprep.subr.bf16.mxu0 (!%p115_p9), %v578_v1  ;;  %p515_p11 = scmp.ne.s32.totalorder (!%p115_p9), %s678_s21, %s514_s26 }
  0x15   : > { %s136_s25 = scalar_select %p135_p10, %s619_s13, 1 }
  0x16   : > { %p516_p12 = pnand %p515_p11, %p636_p5  ;;  %s582_s13 = smov [#allocation2]  }
  0x17   : > { %s418_s28 = sshll.u32 %s136_s25, 2  ;;  %444 = vmatpush3.bf16.msra.mxu0 %v508_v3  ;;  %s341_s25 = scalar_lea.sflag [#allocation3], %s132_s8 }
  0x18   : > { %445 = vmatprep.subr.bf16.mxu0 %v578_v1  ;;  %s138_s5 = scalar_lea.vmem %s719_s0, %s418_s28  ;;  %p517_p13 = pneg %p516_p12 }
  0x19   : > { %v140_v5 = vld [vmem:[%s138_s5] sm:$0xf]  ;;  %s518_s27 = sshll.u32 %s582_s13, 4  ;;  %s519_s27 = int_to_ptr.vmem [resolvable:$false] %s518_s27 }
  0x1a   : > { %s520_s28 = scalar_lea.vmem %s519_s27, 256  ;;  %p521_p0 = scmp.lt.s32.totalorder %s678_s21, %s519_s27 }
  0x1b   : > { %446 = vmatpush3.bf16.msra.mxu0 %v509_v4  ;;  %p522_p1 = scmp.lt.s32.totalorder %s520_s28, %s514_s26 }
  0x1d   : > { %p523_p2 = por %p522_p1, %p521_p0 }
  0x1e   : > { %448 = vmatmul.mubr.msk.bf16.vlgmr.msra.gmra.mrb[0].mxu0 %vm173_vm1, %v140_v5 }
  0x1f   : > { %p524_p3 = pnand %p523_p2, %p517_p13 }
  0xf1   : > { %v211_v6 = vpop.f32.mrb[0].mxu0 }
  0xf2   : > { %v217_v7 = vmul.f32 0.25, %v211_v6  ;;  %v219_v8 = vpack.c.bf16 %v211_v6, %v211_v6  ;;  %v449_v9 = vpop.f32.mrb[1].mxu0 }
  0xf3   : > { %v214_v10 = vpop.f32.mrb[2].mxu0 }
  0xf4   : > { %v450_v11 = vpop.f32.mrb[3].mxu0  ;;  %v228_v12 = vsel %vm223_vm2, %v219_v8, 0  ;;  %v218_v13 = vpack.c.bf16 %v217_v7, %v217_v7 }
  0xf5   : > { %452 = vmatpush3.bf16.xpose.msra.mxu1 %v228_v12 }
  0xf6   : > { %221 = vrot.lane.b32.xlu0 %v218_v13, %s580_s6  ;;  %457 = vmatprep.subr.bf16.mxu1 %v578_v1 }
 0x168   : > { %v222_v14 = vpop.permute.xlu0 %221 }
 0x169   : > { %454 = vmatmul.mubr.msk.bf16.vlgmr.msra.gmra.mrb[0].mxu1 %vm223_vm2, %v222_v14 }
 0x16a   : > { %459 = vmatprep.mubr.msk.bf16.mxu1 %vm579_vm0, %v578_v1 }
 0x23c   : > { %v264_v18 = vpop.f32.mrb[0].mxu1 }
 0x23d   : > { %v275_v19 = vsel %vm274_vm3, %v264_v18, -1e+30  ;;  %v455_v20 = vpop.f32.mrb[1].mxu1 }
 0x23e   : > { %v267_v21 = vpop.f32.mrb[2].mxu1  ;;  %v277_v22 = vsel %vm276_vm4, %v275_v19, -inf }
 0x23f   : > { %278 = vmax.xlane.f32.xlu0 %v277_v22  ;;  %v456_v23 = vpop.f32.mrb[3].mxu1 }
 0x2cc   : > { %v279_v24 = vpop.xlane.xlu0 %278 }
 0x2cd   : > { %v280_v25 = vsub.f32 %v275_v19, %v279_v24 }
 0x2cf   : > { %v281_v26 = vmul.f32 1.442695, %v280_v25 }
 0x2d1   : > { %510 = vpow2.f32 %v281_v26 }
 0x2db   : > { %v511_v27 = vpop.eup %510 }
 0x2dc   : > { %v283_v28 = vsel %vm276_vm4, %v511_v27, 0.0 }
 0x2dd   : > { %284 = vadd.xlane.f32.xlu1 %v283_v28 }
 0x2ee   : > { %290 = vrot.lane.b32.xlu1 %v219_v8, %s581_s7 }
 0x36a   : > { %v285_v29 = vpop.xlane.xlu1 %284 }
 0x36b   : > { %512 = vrcp.f32 %v285_v29 }
 0x36e   : > { %v291_v30 = vpop.permute.xlu1 %290 }
 0x36f   : > { %v297_v31 = vsel %vm295_vm5, %v291_v30, 0 }
 0x370   : > { %458 = vmatpush3.bf16.msra.mxu1 %v297_v31 }
 0x375   : > { %v513_v32 = vpop.eup %512 }
 0x376   : > { %v287_v33 = vmul.f32 %v513_v32, %v511_v27 }
 0x378   : > { %v288_v34 = vpack.c.bf16 %v287_v33, %v287_v33 }
 0x37a   : > { %460 = vmatmul.mubr.msk.bf16.vlgmr.msra.gmra.mrb[4].mxu1 %vm276_vm4, %v288_v34 }
 0x44d   : > { %v333_v35 = vpop.f32.mrb[4].mxu1 }
 0x44e   : > { %339 = vst.msk [vmem:[%s134_s17] sm:$0xff] %vm223_vm2, %v333_v35  ;;  %v461_v36 = vpop.f32.mrb[5].mxu1 }
 0x44f   : > { %v336_v37 = vpop.f32.mrb[6].mxu1 }
 0x450   : > { %527 = shalt.err (!%p524_p3)
}
 0x451   : > { %s528_s29 = scalar_lea.hbm %s676_s24, 128  ;;  %s532_s4 = scalar_lea.hbm %s721_s2, 256 }
 0x452   : > { %p529_p4 = scmp.ne.s32.totalorder %s676_s24, %s528_s29  ;;  %p533_p9 = scmp.lt.u32.totalorder %s676_s24, %s721_s2 }
 0x453   : > { %p534_p10 = scmp.lt.u32.totalorder %s532_s4, %s528_s29  ;;  %p536_p12 = scmp.lt.u32.totalorder %s528_s29, %s676_s24 }
 0x454   : > { %p530_p7 = pnand %p529_p4, %p636_p5 }
 0x455   : > { %p535_p11 = por %p534_p10, %p533_p9 }
 0x456   : > { %p531_p8 = pneg %p530_p7 }
 0x457   : > { %p537_p13 = por %p536_p12, %p535_p11 }
 0x459   : > { %p538_p0 = pnand %p537_p13, %p531_p8 }
 0x45b   : > { %541 = shalt.err (!%p538_p0)
}
 0x45c   : > { %463 = dma.vmem_to_hbm [thread:$0]  (%p636_p5), %s678_s21, 128, %s676_s24, %s341_s25   ;;  %v462_v38 = vpop.f32.mrb[7].mxu1 }
 0x45d PF: > { %p469_p1 = scmp.ge.s32.totalorder %s576_s12, 2  ;;  %s366_s7 = sand.u32 1, %s564_s9  }
 0x45e   : > { %s367_s8 = scalar_lea.sflag [#allocation3], %s366_s7 }
 0x45f   : > { %p466_p2 = pnand %p469_p1, %p640_p6 }
 0x461   : > { %559 = dma.done.wait (!%p466_p2), %s367_s8, 128  }
 0x462   : > { %561 = vsyncadd (!%p466_p2), %s367_s8, 4294967168  ;;  %p12_p3 = scmp.ge.s32.totalorder %s623_s15, 4   ;;  %s724_s9 = smov %s568_s10 }
 0x463   : > { %s725_s10 = smov %s572_s11  ;;  %s726_s11 = smov %s634_s18 }
 0x464   : > { %s727_s12 = smov %s623_s15  ;;  %14 = sbr.rel (!%p12_p3) target bundleno = 3 (0x3), region = 63 }
 0x46b   :  { %372 = vsyncpa [#allocation3], 1 }
 0x46c   :  { %374 = vsyncpa [#allocation3 + $0x1], 1 }

</bundles_post_ra>
